<compile_context>
chip_gen: v7x
topology: tpu7x:2x2x1
jax: 0.10.0
libtpu: 0.0.40
codegen_flags: <defaults>
</compile_context>

<pallas_src>
import functools

import jax
import jax.numpy as jnp
from jax import lax
from jax.experimental import pallas as pl
from jax.experimental.pallas import tpu as pltpu

_EPS = 1e-5


@functools.lru_cache(maxsize=1)
def _tpu_tuning():
    """Per-generation (vmem_limit_bytes, row-tile target).

    v5e/v6e have 128 MiB physical VMEM -> raise the scoped limit and use
    bigger row tiles (fewer ~0.35us grid steps, longer DMAs).  v7x only has
    64 MiB -> keep the conservative settings."""
    vmem = None
    try:
        info = pltpu.get_tpu_info()
        for attr in ("vmem_capacity_bytes", "vmem_bytes", "vmem_size_bytes"):
            v = getattr(info, attr, None)
            if v:
                vmem = int(v)
                break
    except Exception:
        vmem = None
    if vmem is None:
        vmem = 64 * 1024 * 1024
    if vmem >= 96 * 1024 * 1024:          # v5e / v6e
        return 96 * 1024 * 1024, 1024
    return 48 * 1024 * 1024, 512          # v7x


# ----------------------------- Pallas kernels -----------------------------

def _mm_kernel(x_ref, w_ref, shift_ref, o_ref, *, relu):
    """(tm, K) @ (K, Cout) -> +shift (BN scale folded into w) -> optional ReLU."""
    acc = jnp.dot(x_ref[...].astype(w_ref.dtype), w_ref[...],
                  preferred_element_type=jnp.float32)
    y = acc + shift_ref[...]
    if relu:
        y = jnp.maximum(y, 0.0)
    o_ref[...] = y.astype(o_ref.dtype)


def _mm_add_kernel(x_ref, w_ref, shift_ref, skip_ref, o_ref, *, relu):
    """conv1x1_up with identity residual: matmul -> +shift -> +skip -> ReLU."""
    acc = jnp.dot(x_ref[...].astype(w_ref.dtype), w_ref[...],
                  preferred_element_type=jnp.float32)
    y = acc + shift_ref[...] + skip_ref[...].astype(jnp.float32)
    if relu:
        y = jnp.maximum(y, 0.0)
    o_ref[...] = y.astype(o_ref.dtype)


def _mm_mm_kernel(x_ref, w_ref, shift_ref, xs_ref, wd_ref, o_ref, *, relu):
    """conv1x1_up + fused downsample skip conv: relu(x@w + xs@wd + shift)."""
    acc = jnp.dot(x_ref[...].astype(w_ref.dtype), w_ref[...],
                  preferred_element_type=jnp.float32)
    acc = acc + jnp.dot(xs_ref[...].astype(wd_ref.dtype), wd_ref[...],
                        preferred_element_type=jnp.float32)
    y = acc + shift_ref[...]
    if relu:
        y = jnp.maximum(y, 0.0)
    o_ref[...] = y.astype(o_ref.dtype)


def _conv3x3_kernel(x_ref, w_ref, shift_ref, o_ref, *, stride, tho, wo):
    """3x3 conv tile as 3 K-stacked tap matmuls on contiguous 2-D slices.

    x_ref block: (1, stride, 1, (tho + 2//stride) * wo, 3*cin), i.e. the
    width-im2col'ed, row-phase-split, halo-duplicated out1 tile.  Tap dh of
    output row r needs phase dh%stride, phase-row r + dh//stride; with the
    spatial dims pre-flattened that is a *contiguous* static slice, so each
    of the 3 dots feeds the MXU directly (no reshape relayout, K = 3*cin).
    """
    rows = tho * wo
    acc = jnp.dot(x_ref[0, 0, 0, pl.ds(0, rows), :], w_ref[0],
                  preferred_element_type=jnp.float32)
    for dh in (1, 2):
        p, a = dh % stride, dh // stride
        lhs = x_ref[0, p, 0, pl.ds(a * wo, rows), :]
        acc = acc + jnp.dot(lhs, w_ref[dh], preferred_element_type=jnp.float32)
    y = jnp.maximum(acc + shift_ref[...], 0.0)
    o_ref[0] = y.astype(o_ref.dtype)


# ------------------------------ wrappers -----------------------------------

def _pick_tm(m, target):
    """Row tile: multiple of 8, <= target, preferring a divisor of m that
    leaves >= 2 grid blocks (pipelining + 2 TensorCores on v7x).  When no
    clean divisor exists, return a tile plus a padded row count (the caller
    zero-pads and slices) instead of collapsing to one full-height block."""
    cap = min(target, max(8, ((m // 2) // 8) * 8))
    t = cap
    while t >= 8:
        if m % t == 0:
            return t, m
        t -= 8
    half = -(-m // 2)
    t = max(8, (min(target, ((half + 7) // 8) * 8) // 8) * 8)
    m_pad = -(-m // t) * t
    return t, m_pad


def _row_matmul(x2d, w, shift, *, relu=True, skip=None, skip_w=None,
                out_dtype=jnp.bfloat16, tm_target=512, vmem_limit=48 << 20):
    """Fused conv-as-matmul + BN affine (+ residual / fused skip conv) (+ ReLU)."""
    m, k = x2d.shape
    cout = w.shape[-1]
    tm, m_pad = _pick_tm(m, tm_target)
    if m_pad != m:
        x2d = jnp.pad(x2d, ((0, m_pad - m), (0, 0)))
        if skip is not None:
            skip = jnp.pad(skip, ((0, m_pad - m), (0, 0)))
    grid = (m_pad // tm,)

    x_spec = pl.BlockSpec((tm, k), lambda i: (i, 0))
    w_spec = pl.BlockSpec((k, cout), lambda i: (0, 0))
    v_spec = pl.BlockSpec((1, cout), lambda i: (0, 0))
    o_spec = pl.BlockSpec((tm, cout), lambda i: (i, 0))
    cparams = pltpu.CompilerParams(dimension_semantics=("parallel",),
                                   vmem_limit_bytes=vmem_limit)
    out_shape = jax.ShapeDtypeStruct((m_pad, cout), out_dtype)

    if skip is None:
        out = pl.pallas_call(
            functools.partial(_mm_kernel, relu=relu),
            out_shape=out_shape, grid=grid,
            in_specs=[x_spec, w_spec, v_spec], out_specs=o_spec,
            compiler_params=cparams,
        )(x2d, w, shift)
    elif skip_w is None:  # identity residual
        s_spec = pl.BlockSpec((tm, skip.shape[-1]), lambda i: (i, 0))
        out = pl.pallas_call(
            functools.partial(_mm_add_kernel, relu=relu),
            out_shape=out_shape, grid=grid,
            in_specs=[x_spec, w_spec, v_spec, s_spec], out_specs=o_spec,
            compiler_params=cparams,
        )(x2d, w, shift, skip)
    else:                 # fused downsample skip conv
        ks = skip.shape[-1]
        xs_spec = pl.BlockSpec((tm, ks), lambda i: (i, 0))
        wd_spec = pl.BlockSpec((ks, cout), lambda i: (0, 0))
        out = pl.pallas_call(
            functools.partial(_mm_mm_kernel, relu=relu),
            out_shape=out_shape, grid=grid,
            in_specs=[x_spec, w_spec, v_spec, xs_spec, wd_spec],
            out_specs=o_spec, compiler_params=cparams,
        )(x2d, w, shift, skip, skip_w)

    return out[:m] if m_pad != m else out


def _pick_tho(ho, wo, kdim, cout, stride, budget):
    """Output-row tile for K2: divides ho, keeps the flattened tile a multiple
    of 8 rows, bounds per-step VMEM (double-buffered in/out + f32 acc), and
    prefers >= 2 tiles per image so the DMA pipeline has work to overlap."""
    halo = 2 // stride

    def step_bytes(t):
        return (2 * stride * (t + halo) * wo * kdim * 2   # input, 2 buffers
                + 2 * t * wo * cout * 2                    # output, 2 buffers
                + t * wo * cout * 4)                       # f32 accumulator

    cands = [t for t in range(1, ho + 1)
             if ho % t == 0 and (t == ho or (t * wo) % 8 == 0)
             and step_bytes(t) <= budget]
    if not cands:
        return ho
    multi = [t for t in cands if ho // t >= 2]
    return max(multi) if multi else max(cands)


def _prep_conv3x3_input(out1, stride, ho, wo, tho):
    """Pad (pad=1), width-im2col (3 dw taps stacked along channels, output
    stride baked in), row-phase-split by the stride and pre-tile along output
    rows with the halo duplicated.  One fused XLA pass over the bf16 out1
    tensor; the K2 kernel then only needs contiguous 2-D slices."""
    n, h, w, c = out1.shape
    s = stride
    halo = 2 // s
    hq = ho + halo                       # phase-rows needed per phase
    hpad = s * hq
    wpad = s * (wo - 1) + 3
    xp = jnp.pad(out1, ((0, 0), (1, hpad - h - 1), (1, wpad - w - 1), (0, 0)))
    # width im2col: xw[n, i, q, dw*c + ci] = xp[n, i, s*q + dw, ci]
    cols = [xp[:, :, dw:dw + s * (wo - 1) + 1:s, :] for dw in range(3)]
    xw = jnp.stack(cols, axis=3).reshape(n, hpad, wo, 3 * c)
    # row phase split: padded row a*s + p -> phase p, phase-row a
    xw = xw.reshape(n, hq, s, wo, 3 * c).transpose(0, 2, 1, 3, 4)
    # disjoint output-row tiles with the 3x3 halo duplicated (Blocked-indexable)
    n_t = ho // tho
    tiles = [xw[:, :, j * tho:j * tho + tho + halo] for j in range(n_t)]
    xw = jnp.stack(tiles, axis=2)        # (n, s, n_t, tho+halo, wo, 3c)
    return xw.reshape(n, s, n_t, (tho + halo) * wo, 3 * c)


def _conv3x3_bn_relu(xw, w2k, shift, *, tho, wo, vmem_limit):
    n, s, n_t, tile_rows, kdim = xw.shape
    cout = w2k.shape[-1]
    kernel = functools.partial(_conv3x3_kernel, stride=s, tho=tho, wo=wo)
    return pl.pallas_call(
        kernel,
        out_shape=jax.ShapeDtypeStruct((n, n_t * tho * wo, cout), jnp.bfloat16),
        grid=(n, n_t),
        in_specs=[
            pl.BlockSpec((1, s, 1, tile_rows, kdim), lambda i, j: (i, 0, j, 0, 0)),
            pl.BlockSpec((3, kdim, cout), lambda i, j: (0, 0, 0)),
            pl.BlockSpec((1, cout), lambda i, j: (0, 0)),
        ],
        out_specs=pl.BlockSpec((1, tho * wo, cout), lambda i, j: (i, j, 0)),
        compiler_params=pltpu.CompilerParams(
            dimension_semantics=("parallel", "parallel"),
            vmem_limit_bytes=vmem_limit),
    )(xw, w2k, shift)


# ------------------------------ forward ------------------------------------

def _fold_bn(bn):
    scale = bn["gamma"] / jnp.sqrt(bn["var"] + _EPS)
    shift = bn["beta"] - bn["mean"] * scale
    return scale, shift


def bottleneck_forward(x_nchw, params, stride):
    vmem_limit, tm_target = _tpu_tuning()

    # NCHW -> NHWC with the bf16 cast fused into the entry transpose:
    # K1 and the K3 skip path are HBM-bound, so bf16 x halves their DMA bytes.
    x = jnp.transpose(x_nchw, (0, 2, 3, 1)).astype(jnp.bfloat16)
    n, h, w, cin = x.shape
    ch = params["w1"].shape[-1]
    cout = 4 * ch

    # K1: conv1x1_down + BN + ReLU (bf16 output, BN scale folded into weights)
    s1, b1 = _fold_bn(params["bn1"])
    w1f = (params["w1"].reshape(cin, ch) * s1[None, :]).astype(jnp.bfloat16)
    out1 = _row_matmul(x.reshape(n * h * w, cin), w1f, b1.reshape(1, ch),
                       relu=True, out_dtype=jnp.bfloat16,
                       tm_target=tm_target, vmem_limit=vmem_limit)
    out1 = out1.reshape(n, h, w, ch)

    # K2: conv3x3 (stride, pad=1) + BN + ReLU, K-stacked taps, tiled grid
    ho = (h - 1) // stride + 1
    wo = (w - 1) // stride + 1
    tho = _pick_tho(ho, wo, 3 * ch, ch, stride,
                    budget=min(8 * 1024 * 1024, vmem_limit // 4))
    xw = _prep_conv3x3_input(out1, stride, ho, wo, tho)
    s2, b2 = _fold_bn(params["bn2"])
    w2k = (params["w2"] * s2[None, None, None, :]).reshape(3, 3 * ch, ch)
    w2k = w2k.astype(jnp.bfloat16)
    out2 = _conv3x3_bn_relu(xw, w2k, b2.reshape(1, ch),
                            tho=tho, wo=wo, vmem_limit=vmem_limit)
    out2 = out2.reshape(n * ho * wo, ch)

    # K3: conv1x1_up + BN + residual + ReLU (downsample skip conv fused in)
    s3, b3 = _fold_bn(params["bn3"])
    w3f = (params["w3"].reshape(ch, cout) * s3[None, :]).astype(jnp.bfloat16)
    if stride != 1 or cin != cout:
        sd, bd = _fold_bn(params["bnd"])
        wdf = (params["wd"].reshape(cin, cout) * sd[None, :]).astype(jnp.bfloat16)
        xs = x[:, ::stride, ::stride, :].reshape(n * ho * wo, cin)
        out = _row_matmul(out2, w3f, (b3 + bd).reshape(1, cout), relu=True,
                          skip=xs, skip_w=wdf, out_dtype=jnp.bfloat16,
                          tm_target=tm_target, vmem_limit=vmem_limit)
    else:
        out = _row_matmul(out2, w3f, b3.reshape(1, cout), relu=True,
                          skip=x.reshape(n * h * w, cin),
                          out_dtype=jnp.bfloat16,
                          tm_target=tm_target, vmem_limit=vmem_limit)

    out = out.reshape(n, ho, wo, cout)
    # NHWC -> NCHW on bf16 (half the transpose traffic), upcast once at the end.
    return jnp.transpose(out, (0, 3, 1, 2)).astype(jnp.float32)


# --------------------- deterministic parameter init ------------------------

def init_params(key, cin, ch, stride):
    ks = iter(jax.random.split(key, 32))

    def conv_w(kh, kw, ci, co):
        fan_in = kh * kw * ci
        return (jax.random.normal(next(ks), (kh, kw, ci, co), jnp.float32)
                / jnp.sqrt(fan_in))

    def bn(c):
        return dict(
            gamma=jax.random.uniform(next(ks), (c,), jnp.float32, 0.5, 1.5),
            beta=0.1 * jax.random.normal(next(ks), (c,), jnp.float32),
            mean=0.1 * jax.random.normal(next(ks), (c,), jnp.float32),
            var=jax.random.uniform(next(ks), (c,), jnp.float32, 0.5, 1.5),
        )

    p = dict(
        w1=conv_w(1, 1, cin, ch), bn1=bn(ch),         # conv1x1_down
        w2=conv_w(3, 3, ch, ch), bn2=bn(ch),          # conv3x3
        w3=conv_w(1, 1, ch, 4 * ch), bn3=bn(4 * ch),  # conv1x1_up
    )
    if stride != 1 or cin != 4 * ch:
        p["wd"] = conv_w(1, 1, cin, 4 * ch)           # skip 1x1 conv
        p["bnd"] = bn(4 * ch)
    return p


# --------------------------- pure-JAX reference -----------------------------

def _conv_bn_ref(x, w_hwio, bn, stride, padding, relu):
    y = lax.conv_general_dilated(
        x, w_hwio, (stride, stride), padding,
        dimension_numbers=("NHWC", "HWIO", "NHWC"),
        precision=lax.Precision.HIGHEST)
    y = (y - bn["mean"]) / jnp.sqrt(bn["var"] + _EPS) * bn["gamma"] + bn["beta"]
    return jnp.maximum(y, 0.0) if relu else y


def bottleneck_ref(x_nchw, params, stride):
    x = jnp.transpose(x_nchw, (0, 2, 3, 1))
    cin = x.shape[-1]
    ch = params["w1"].shape[-1]
    o1 = _conv_bn_ref(x, params["w1"], params["bn1"], 1, "VALID", True)
    o2 = _conv_bn_ref(o1, params["w2"], params["bn2"], stride,
                      [(1, 1), (1, 1)], True)
    o3 = _conv_bn_ref(o2, params["w3"], params["bn3"], 1, "VALID", False)
    if stride != 1 or cin != 4 * ch:
        skip = _conv_bn_ref(x, params["wd"], params["bnd"], stride, "VALID",
                            False)
    else:
        skip = x
    out = jnp.maximum(o3 + skip, 0.0)
    return jnp.transpose(out, (0, 3, 1, 2))


# --------------------------------- main -------------------------------------

if __name__ == "__main__":
    def run_case(name, N, Cin, H, W, Ch, stride, key):
        kx, kp = jax.random.split(key)
        x = jax.random.normal(kx, (N, Cin, H, W), jnp.float32)
        params = init_params(kp, Cin, Ch, stride)
        fwd = jax.jit(functools.partial(bottleneck_forward, stride=stride))
        out = jax.block_until_ready(fwd(x, params))
        Ho = (H - 1) // stride + 1
        Wo = (W - 1) // stride + 1
        assert out.shape == (N, 4 * Ch, Ho, Wo), (name, out.shape)
        ref = jax.block_until_ready(bottleneck_ref(x, params, stride))
        # bf16 MXU inputs / bf16 activations (f32 accumulation) vs. an
        # f32/HIGHEST reference -> bf16-appropriate tolerance; structural bugs
        # give O(1) errors and are still caught.
        if not bool(jnp.allclose(out, ref, rtol=5e-2, atol=1e-1)):
            raise AssertionError(
                f"{name}: mismatch vs reference, max abs err="
                f"{float(jnp.max(jnp.abs(out - ref)))}")

    key = jax.random.PRNGKey(0)
    k1, k2 = jax.random.split(key)
    # strided block with fused downsample skip conv
    run_case("downsample", 2, 4, 16, 16, 8, 2, k1)
    # stride-1 block with identity residual (cin == 4*ch)
    run_case("identity", 2, 32, 8, 8, 8, 1, k2)
    print("KERNEL_OK")
</pallas_src>

<mosaic_0001>
module attributes {stable_mosaic.version = 11 : i64} {
  func.func @_mm_kernel(%arg0: i32, %arg1: memref<256x4xbf16, #tpu.memory_space<vmem>>, %arg2: memref<4x8xbf16, #tpu.memory_space<vmem>>, %arg3: memref<1x8xf32, #tpu.memory_space<vmem>>, %arg4: memref<256x8xbf16, #tpu.memory_space<vmem>>) attributes {dimension_semantics = [#tpu.dimension_semantics<parallel>], iteration_bounds = array<i64: 2>, scalar_prefetch = 0 : i64, scratch_operands = 0 : i64, tpu.core_type = #tpu.core_type<tc>, window_params = [{transform_indices = @transform_0, window_bounds = array<i64: 256, 4>}, {pipeline_mode = #tpu.pipeline_mode<synchronous>, transform_indices = @transform_1, window_bounds = array<i64: 4, 8>}, {pipeline_mode = #tpu.pipeline_mode<synchronous>, transform_indices = @transform_2, window_bounds = array<i64: 1, 8>}, {transform_indices = @transform_3, window_bounds = array<i64: 256, 8>}]} {
    %c0 = arith.constant 0 : index
    %c0_0 = arith.constant 0 : index
    %0 = vector.load %arg1[%c0, %c0_0] : memref<256x4xbf16, #tpu.memory_space<vmem>>, vector<256x4xbf16>
    %c0_1 = arith.constant 0 : index
    %c0_2 = arith.constant 0 : index
    %1 = vector.load %arg2[%c0_1, %c0_2] : memref<4x8xbf16, #tpu.memory_space<vmem>>, vector<4x8xbf16>
    %cst = arith.constant dense<0.000000e+00> : vector<256x8xf32>
    %2 = tpu.matmul %0, %1, %cst {dimension_numbers = #tpu.dot_dimension_numbers<[1], [0], [0], [1], [0, 0, 1, 1], [], []>} : vector<256x4xbf16>, vector<4x8xbf16>, vector<256x8xf32> -> vector<256x8xf32>
    %c0_3 = arith.constant 0 : index
    %c0_4 = arith.constant 0 : index
    %3 = vector.load %arg3[%c0_3, %c0_4] : memref<1x8xf32, #tpu.memory_space<vmem>>, vector<1x8xf32>
    %4 = vector.broadcast %3 : vector<1x8xf32> to vector<256x8xf32>
    %5 = arith.addf %2, %4 : vector<256x8xf32>
    %cst_5 = arith.constant 0.000000e+00 : f32
    %6 = vector.broadcast %cst_5 : f32 to vector<256x8xf32>
    %7 = arith.maximumf %5, %6 : vector<256x8xf32>
    %8 = arith.truncf %7 : vector<256x8xf32> to vector<256x8xbf16>
    %c0_6 = arith.constant 0 : index
    %c0_7 = arith.constant 0 : index
    %9 = vector.load %arg4[%c0_6, %c0_7] : memref<256x8xbf16, #tpu.memory_space<vmem>>, vector<256x8xbf16>
    tpu.vector_store %arg4[%c0_6, %c0_7], %8 {strides = array<i32>} : memref<256x8xbf16, #tpu.memory_space<vmem>>, vector<256x8xbf16>,
    return
  }
  func.func @transform_0(%arg0: i32) -> (i32, i32) {
    %c0_i32 = arith.constant 0 : i32
    %c0_i32_0 = arith.constant 0 : i32
    return %arg0, %c0_i32 : i32, i32
  }
  func.func @transform_1(%arg0: i32) -> (i32, i32) {
    %c0_i32 = arith.constant 0 : i32
    %c0_i32_0 = arith.constant 0 : i32
    %c0_i32_1 = arith.constant 0 : i32
    return %c0_i32, %c0_i32_0 : i32, i32
  }
  func.func @transform_2(%arg0: i32) -> (i32, i32) {
    %c0_i32 = arith.constant 0 : i32
    %c0_i32_0 = arith.constant 0 : i32
    %c0_i32_1 = arith.constant 0 : i32
    return %c0_i32, %c0_i32_0 : i32, i32
  }
  func.func @transform_3(%arg0: i32) -> (i32, i32) {
    %c0_i32 = arith.constant 0 : i32
    %c0_i32_0 = arith.constant 0 : i32
    return %arg0, %c0_i32 : i32, i32
  }
}

module attributes {stable_mosaic.version = 11 : i64} {
  func.func @_conv3x3_kernel(%arg0: i32, %arg1: i32, %arg2: memref<1x2x1x40x24xbf16, #tpu.memory_space<vmem>>, %arg3: memref<3x24x8xbf16, #tpu.memory_space<vmem>>, %arg4: memref<1x8xf32, #tpu.memory_space<vmem>>, %arg5: memref<1x32x8xbf16, #tpu.memory_space<vmem>>) attributes {dimension_semantics = [#tpu.dimension_semantics<parallel>, #tpu.dimension_semantics<parallel>], iteration_bounds = array<i64: 2, 2>, scalar_prefetch = 0 : i64, scratch_operands = 0 : i64, tpu.core_type = #tpu.core_type<tc>, window_params = [{transform_indices = @transform_0, window_bounds = array<i64: 1, 2, 1, 40, 24>}, {pipeline_mode = #tpu.pipeline_mode<synchronous>, transform_indices = @transform_1, window_bounds = array<i64: 3, 24, 8>}, {pipeline_mode = #tpu.pipeline_mode<synchronous>, transform_indices = @transform_2, window_bounds = array<i64: 1, 8>}, {transform_indices = @transform_3, window_bounds = array<i64: 1, 32, 8>}]} {
    %c0 = arith.constant 0 : index
    %c0_0 = arith.constant 0 : index
    %c0_1 = arith.constant 0 : index
    %c0_2 = arith.constant 0 : index
    %c0_3 = arith.constant 0 : index
    %0 = vector.load %arg2[%c0, %c0_0, %c0_1, %c0_2, %c0_3] : memref<1x2x1x40x24xbf16, #tpu.memory_space<vmem>>, vector<1x1x1x32x24xbf16>
    %1 = vector.shape_cast %0 : vector<1x1x1x32x24xbf16> to vector<32x24xbf16>
    %c0_4 = arith.constant 0 : index
    %c0_5 = arith.constant 0 : index
    %c0_6 = arith.constant 0 : index
    %2 = vector.load %arg3[%c0_4, %c0_5, %c0_6] : memref<3x24x8xbf16, #tpu.memory_space<vmem>>, vector<1x24x8xbf16>
    %3 = vector.shape_cast %2 : vector<1x24x8xbf16> to vector<24x8xbf16>
    %cst = arith.constant dense<0.000000e+00> : vector<32x8xf32>
    %4 = tpu.matmul %1, %3, %cst {dimension_numbers = #tpu.dot_dimension_numbers<[1], [0], [0], [1], [0, 0, 1, 1], [], []>} : vector<32x24xbf16>, vector<24x8xbf16>, vector<32x8xf32> -> vector<32x8xf32>
    %c0_7 = arith.constant 0 : index
    %c1 = arith.constant 1 : index
    %c0_8 = arith.constant 0 : index
    %c0_9 = arith.constant 0 : index
    %c0_10 = arith.constant 0 : index
    %5 = vector.load %arg2[%c0_7, %c1, %c0_8, %c0_9, %c0_10] : memref<1x2x1x40x24xbf16, #tpu.memory_space<vmem>>, vector<1x1x1x32x24xbf16>
    %6 = vector.shape_cast %5 : vector<1x1x1x32x24xbf16> to vector<32x24xbf16>
    %c1_11 = arith.constant 1 : index
    %c0_12 = arith.constant 0 : index
    %c0_13 = arith.constant 0 : index
    %7 = vector.load %arg3[%c1_11, %c0_12, %c0_13] : memref<3x24x8xbf16, #tpu.memory_space<vmem>>, vector<1x24x8xbf16>
    %8 = vector.shape_cast %7 : vector<1x24x8xbf16> to vector<24x8xbf16>
    %cst_14 = arith.constant dense<0.000000e+00> : vector<32x8xf32>
    %9 = tpu.matmul %6, %8, %cst_14 {dimension_numbers = #tpu.dot_dimension_numbers<[1], [0], [0], [1], [0, 0, 1, 1], [], []>} : vector<32x24xbf16>, vector<24x8xbf16>, vector<32x8xf32> -> vector<32x8xf32>
    %10 = arith.addf %4, %9 : vector<32x8xf32>
    %c0_15 = arith.constant 0 : index
    %c0_16 = arith.constant 0 : index
    %c0_17 = arith.constant 0 : index
    %c8 = arith.constant 8 : index
    %c0_18 = arith.constant 0 : index
    %11 = vector.load %arg2[%c0_15, %c0_16, %c0_17, %c8, %c0_18] : memref<1x2x1x40x24xbf16, #tpu.memory_space<vmem>>, vector<1x1x1x32x24xbf16>
    %12 = vector.shape_cast %11 : vector<1x1x1x32x24xbf16> to vector<32x24xbf16>
    %c2 = arith.constant 2 : index
    %c0_19 = arith.constant 0 : index
    %c0_20 = arith.constant 0 : index
    %13 = vector.load %arg3[%c2, %c0_19, %c0_20] : memref<3x24x8xbf16, #tpu.memory_space<vmem>>, vector<1x24x8xbf16>
    %14 = vector.shape_cast %13 : vector<1x24x8xbf16> to vector<24x8xbf16>
    %cst_21 = arith.constant dense<0.000000e+00> : vector<32x8xf32>
    %15 = tpu.matmul %12, %14, %cst_21 {dimension_numbers = #tpu.dot_dimension_numbers<[1], [0], [0], [1], [0, 0, 1, 1], [], []>} : vector<32x24xbf16>, vector<24x8xbf16>, vector<32x8xf32> -> vector<32x8xf32>
    %16 = arith.addf %10, %15 : vector<32x8xf32>
    %c0_22 = arith.constant 0 : index
    %c0_23 = arith.constant 0 : index
    %17 = vector.load %arg4[%c0_22, %c0_23] : memref<1x8xf32, #tpu.memory_space<vmem>>, vector<1x8xf32>
    %18 = vector.broadcast %17 : vector<1x8xf32> to vector<32x8xf32>
    %19 = arith.addf %16, %18 : vector<32x8xf32>
    %cst_24 = arith.constant 0.000000e+00 : f32
    %20 = vector.broadcast %cst_24 : f32 to vector<32x8xf32>
    %21 = arith.maximumf %19, %20 : vector<32x8xf32>
    %22 = arith.truncf %21 : vector<32x8xf32> to vector<32x8xbf16>
    %c0_25 = arith.constant 0 : index
    %c0_26 = arith.constant 0 : index
    %c0_27 = arith.constant 0 : index
    %23 = vector.load %arg5[%c0_25, %c0_26, %c0_27] : memref<1x32x8xbf16, #tpu.memory_space<vmem>>, vector<1x32x8xbf16>
    %24 = vector.shape_cast %23 : vector<1x32x8xbf16> to vector<32x8xbf16>
    %25 = vector.shape_cast %22 : vector<32x8xbf16> to vector<1x32x8xbf16>
    tpu.vector_store %arg5[%c0_25, %c0_26, %c0_27], %25 {strides = array<i32>} : memref<1x32x8xbf16, #tpu.memory_space<vmem>>, vector<1x32x8xbf16>,
    return
  }
  func.func @transform_0(%arg0: i32, %arg1: i32) -> (i32, i32, i32, i32, i32) {
    %c0_i32 = arith.constant 0 : i32
    %c0_i32_0 = arith.constant 0 : i32
    %c0_i32_1 = arith.constant 0 : i32
    %c0_i32_2 = arith.constant 0 : i32
    return %arg0, %c0_i32, %arg1, %c0_i32_0, %c0_i32_1 : i32, i32, i32, i32, i32
  }
  func.func @transform_1(%arg0: i32, %arg1: i32) -> (i32, i32, i32) {
    %c0_i32 = arith.constant 0 : i32
    %c0_i32_0 = arith.constant 0 : i32
    %c0_i32_1 = arith.constant 0 : i32
    %c0_i32_2 = arith.constant 0 : i32
    return %c0_i32, %c0_i32_0, %c0_i32_1 : i32, i32, i32
  }
  func.func @transform_2(%arg0: i32, %arg1: i32) -> (i32, i32) {
    %c0_i32 = arith.constant 0 : i32
    %c0_i32_0 = arith.constant 0 : i32
    %c0_i32_1 = arith.constant 0 : i32
    return %c0_i32, %c0_i32_0 : i32, i32
  }
  func.func @transform_3(%arg0: i32, %arg1: i32) -> (i32, i32, i32) {
    %c0_i32 = arith.constant 0 : i32
    %c0_i32_0 = arith.constant 0 : i32
    return %arg0, %arg1, %c0_i32 : i32, i32, i32
  }
}

module attributes {stable_mosaic.version = 11 : i64} {
  func.func @_mm_mm_kernel(%arg0: i32, %arg1: memref<64x8xbf16, #tpu.memory_space<vmem>>, %arg2: memref<8x32xbf16, #tpu.memory_space<vmem>>, %arg3: memref<1x32xf32, #tpu.memory_space<vmem>>, %arg4: memref<64x4xbf16, #tpu.memory_space<vmem>>, %arg5: memref<4x32xbf16, #tpu.memory_space<vmem>>, %arg6: memref<64x32xbf16, #tpu.memory_space<vmem>>) attributes {dimension_semantics = [#tpu.dimension_semantics<parallel>], iteration_bounds = array<i64: 2>, scalar_prefetch = 0 : i64, scratch_operands = 0 : i64, tpu.core_type = #tpu.core_type<tc>, window_params = [{transform_indices = @transform_0, window_bounds = array<i64: 64, 8>}, {pipeline_mode = #tpu.pipeline_mode<synchronous>, transform_indices = @transform_1, window_bounds = array<i64: 8, 32>}, {pipeline_mode = #tpu.pipeline_mode<synchronous>, transform_indices = @transform_2, window_bounds = array<i64: 1, 32>}, {transform_indices = @transform_3, window_bounds = array<i64: 64, 4>}, {pipeline_mode = #tpu.pipeline_mode<synchronous>, transform_indices = @transform_4, window_bounds = array<i64: 4, 32>}, {transform_indices = @transform_5, window_bounds = array<i64: 64, 32>}]} {
    %c0 = arith.constant 0 : index
    %c0_0 = arith.constant 0 : index
    %0 = vector.load %arg1[%c0, %c0_0] : memref<64x8xbf16, #tpu.memory_space<vmem>>, vector<64x8xbf16>
    %c0_1 = arith.constant 0 : index
    %c0_2 = arith.constant 0 : index
    %1 = vector.load %arg2[%c0_1, %c0_2] : memref<8x32xbf16, #tpu.memory_space<vmem>>, vector<8x32xbf16>
    %cst = arith.constant dense<0.000000e+00> : vector<64x32xf32>
    %2 = tpu.matmul %0, %1, %cst {dimension_numbers = #tpu.dot_dimension_numbers<[1], [0], [0], [1], [0, 0, 1, 1], [], []>} : vector<64x8xbf16>, vector<8x32xbf16>, vector<64x32xf32> -> vector<64x32xf32>
    %c0_3 = arith.constant 0 : index
    %c0_4 = arith.constant 0 : index
    %3 = vector.load %arg4[%c0_3, %c0_4] : memref<64x4xbf16, #tpu.memory_space<vmem>>, vector<64x4xbf16>
    %c0_5 = arith.constant 0 : index
    %c0_6 = arith.constant 0 : index
    %4 = vector.load %arg5[%c0_5, %c0_6] : memref<4x32xbf16, #tpu.memory_space<vmem>>, vector<4x32xbf16>
    %cst_7 = arith.constant dense<0.000000e+00> : vector<64x32xf32>
    %5 = tpu.matmul %3, %4, %cst_7 {dimension_numbers = #tpu.dot_dimension_numbers<[1], [0], [0], [1], [0, 0, 1, 1], [], []>} : vector<64x4xbf16>, vector<4x32xbf16>, vector<64x32xf32> -> vector<64x32xf32>
    %6 = arith.addf %2, %5 : vector<64x32xf32>
    %c0_8 = arith.constant 0 : index
    %c0_9 = arith.constant 0 : index
    %7 = vector.load %arg3[%c0_8, %c0_9] : memref<1x32xf32, #tpu.memory_space<vmem>>, vector<1x32xf32>
    %8 = vector.broadcast %7 : vector<1x32xf32> to vector<64x32xf32>
    %9 = arith.addf %6, %8 : vector<64x32xf32>
    %cst_10 = arith.constant 0.000000e+00 : f32
    %10 = vector.broadcast %cst_10 : f32 to vector<64x32xf32>
    %11 = arith.maximumf %9, %10 : vector<64x32xf32>
    %12 = arith.truncf %11 : vector<64x32xf32> to vector<64x32xbf16>
    %c0_11 = arith.constant 0 : index
    %c0_12 = arith.constant 0 : index
    %13 = vector.load %arg6[%c0_11, %c0_12] : memref<64x32xbf16, #tpu.memory_space<vmem>>, vector<64x32xbf16>
    tpu.vector_store %arg6[%c0_11, %c0_12], %12 {strides = array<i32>} : memref<64x32xbf16, #tpu.memory_space<vmem>>, vector<64x32xbf16>,
    return
  }
  func.func @transform_0(%arg0: i32) -> (i32, i32) {
    %c0_i32 = arith.constant 0 : i32
    %c0_i32_0 = arith.constant 0 : i32
    return %arg0, %c0_i32 : i32, i32
  }
  func.func @transform_1(%arg0: i32) -> (i32, i32) {
    %c0_i32 = arith.constant 0 : i32
    %c0_i32_0 = arith.constant 0 : i32
    %c0_i32_1 = arith.constant 0 : i32
    return %c0_i32, %c0_i32_0 : i32, i32
  }
  func.func @transform_2(%arg0: i32) -> (i32, i32) {
    %c0_i32 = arith.constant 0 : i32
    %c0_i32_0 = arith.constant 0 : i32
    %c0_i32_1 = arith.constant 0 : i32
    return %c0_i32, %c0_i32_0 : i32, i32
  }
  func.func @transform_3(%arg0: i32) -> (i32, i32) {
    %c0_i32 = arith.constant 0 : i32
    %c0_i32_0 = arith.constant 0 : i32
    return %arg0, %c0_i32 : i32, i32
  }
  func.func @transform_4(%arg0: i32) -> (i32, i32) {
    %c0_i32 = arith.constant 0 : i32
    %c0_i32_0 = arith.constant 0 : i32
    %c0_i32_1 = arith.constant 0 : i32
    return %c0_i32, %c0_i32_0 : i32, i32
  }
  func.func @transform_5(%arg0: i32) -> (i32, i32) {
    %c0_i32 = arith.constant 0 : i32
    %c0_i32_0 = arith.constant 0 : i32
    return %arg0, %c0_i32 : i32, i32
  }
}

</mosaic_0001>

<bundles_post_ra>
// kernel: bottleneck_forward.3
= control target key start
LH: loop header
LB: loop body
LE: loop exit
PB: predicated region body
PF: predicated region fallthrough
CT: control target
= control target key end

     0   :  { %s973_s12 = smov 0   ;;  %s1137_s0 = inlined_call_operand.vmem [shape: bf16[512,4], index: 0, kind: input, shape index: {}]   ;;  %s1138_s1 = inlined_call_operand.vmem [shape: bf16[4,8], index: 1, kind: input, shape index: {}]   ;;  %s1139_s2 = inlined_call_operand.vmem [shape: f32[1,8], index: 2, kind: input, shape index: {}]   ;;  %s1140_s3 = inlined_call_operand.vmem [shape: bf16[512,8], index: 3, kind: output, shape index: {}]  }
   0x1 LB: > { %s758_s13 = sadd.s32 4294967295, %s951_s12   ;;  %p762_p0 = scmp.ge.s32.totalorder %s951_s12, 1  ;;  %s951_s12 = sphi %s973_s12, %s13_s12  }
   0x2   : > { %p138_p1 = scmp.lt.s32.totalorder %s951_s12, 3 }
   0x4   : > { %p139_p2 = pnand %p762_p0, %p138_p1 }
   0x5   : > { %v207_v0 = vld [vmem:[%s1138_s1] sm:$0x3] (!%p139_p2)  ;;  %vm344_vm0 = vcmask (!%p139_p2), 1041408   ;;  %s763_s16 = sshll.u32 (!%p139_p2), %s758_s13, 5  ;;  %vm295_vm1 = vcmask (!%p139_p2), 31744   ;;  %vm669_vm2 = vcmask (!%p139_p2), 60416  }
   0x6   : > { %142 = sbr.rel (%p139_p2) target bundleno = 265 (0x109), region = 32  ;;  %919 = vmatprep.subr.msk.bf16.mxu0 (!%p139_p2), %vm344_vm0, %v207_v0  ;;  %920 = vmatprep.subr.msk.bf16.mxu1 (!%p139_p2), %vm344_vm0, %v207_v0  ;;  %v346_v1 = vsel (!%p139_p2), %vm344_vm0, %v207_v0, 0  ;;  %p163_p3 = scmp.lt.s32.totalorder (!%p139_p2), %s763_s16, 63  ;;  %v1029_v18 = vld [vmem:[%s1139_s2] ss:$0 sm:$0xff] (!%p139_p2) }
   0x7   : > { %884 = vmatpush3.bf16.msra.mxu0 (!%p139_p2), %v346_v1  ;;  %918 = vmatpush3.bf16.msra.mxu1 (!%p139_p2), %v346_v1 }
   0xd   : > { %s1142_s16 = smov (!%p163_p3, %s763_s16), 63 }
   0xe   : > { %s764_s17 = sshll.u32 %s1142_s16, 2 }
   0xf   : > { %s992_s20 = scalar_lea.vmem %s1137_s0, %s764_s17  ;;  %s1041_s25 = scalar_lea.vmem %s1140_s3, %s764_s17 }
  0x10   : > { %v929_v2 = vld [vmem:[%s992_s20] sm:$0xff]   ;;  %v931_v4 = vld [vmem:[%s992_s20 + $0x8] sm:$0xff]   ;;  %v933_v6 = vld [vmem:[%s992_s20 + $0x10] sm:$0xff]  }
  0x11   : > { %v930_v3 = vld [vmem:[%s992_s20 + $0x40] sm:$0xff]   ;;  %885 = vmatprep.mubr.msk.bf16.mxu0 %vm295_vm1, %v929_v2  ;;  %v932_v5 = vld [vmem:[%s992_s20 + $0x48] sm:$0xff]   ;;  %v934_v7 = vld [vmem:[%s992_s20 + $0x50] sm:$0xff]  }
  0x12   : > { %901 = vmatprep.mubr.msk.bf16.mxu1 %vm295_vm1, %v930_v3  ;;  %886 = vmatmul.mubr.msk.bf16.vlgmr.msra.gmra.mrb[0].mxu0 %vm295_vm1, %v931_v4  ;;  %v935_v8 = vld [vmem:[%s992_s20 + $0x18] sm:$0xff]   ;;  %v937_v10 = vld [vmem:[%s992_s20 + $0x20] sm:$0xff]   ;;  %v939_v12 = vld [vmem:[%s992_s20 + $0x28] sm:$0xff]  }
  0x13   : > { %902 = vmatmul.mubr.msk.bf16.vlgmr.msra.gmra.mrb[0].mxu1 %vm295_vm1, %v932_v5  ;;  %889 = vmatprep.mubr.msk.bf16.mxu0 %vm295_vm1, %v933_v6  ;;  %v936_v9 = vld [vmem:[%s992_s20 + $0x58] sm:$0xff]   ;;  %v938_v11 = vld [vmem:[%s992_s20 + $0x60] sm:$0xff]   ;;  %v940_v13 = vld [vmem:[%s992_s20 + $0x68] sm:$0xff]  }
  0x14   : > { %905 = vmatprep.mubr.msk.bf16.mxu1 %vm295_vm1, %v934_v7  ;;  %v941_v14 = vld [vmem:[%s992_s20 + $0x30] sm:$0xff]   ;;  %v943_v16 = vld [vmem:[%s992_s20 + $0x38] sm:$0xff]  }
  0x15   : > { %v942_v15 = vld [vmem:[%s992_s20 + $0x70] sm:$0xff]   ;;  %v944_v17 = vld [vmem:[%s992_s20 + $0x78] sm:$0xff]  }
  0x1a   : > { %890 = vmatmul.mubr.msk.bf16.gmra.mrb[4].mxu0 %vm295_vm1, %v935_v8 }
  0x1b   : > { %906 = vmatmul.mubr.msk.bf16.gmra.mrb[4].mxu1 %vm295_vm1, %v936_v9  ;;  %893 = vmatprep.mubr.msk.bf16.mxu0 %vm295_vm1, %v937_v10 }
  0x1c   : > { %909 = vmatprep.mubr.msk.bf16.mxu1 %vm295_vm1, %v938_v11 }
  0x22   : > { %894 = vmatmul.mubr.msk.bf16.gmra.mrb[8].mxu0 %vm295_vm1, %v939_v12 }
  0x23   : > { %910 = vmatmul.mubr.msk.bf16.gmra.mrb[8].mxu1 %vm295_vm1, %v940_v13  ;;  %897 = vmatprep.mubr.msk.bf16.mxu0 %vm295_vm1, %v941_v14 }
  0x24   : > { %913 = vmatprep.mubr.msk.bf16.mxu1 %vm295_vm1, %v942_v15 }
  0x2a   : > { %898 = vmatmul.mubr.msk.bf16.gmra.mrb[12].mxu0 %vm295_vm1, %v943_v16 }
  0x2b   : > { %914 = vmatmul.mubr.msk.bf16.gmra.mrb[12].mxu1 %vm295_vm1, %v944_v17 }
  0xe5   : > { %v887_v19 = vpop.f32.mrb[0].mxu0 }
  0xe6   : > { %v391_v20 = vadd.f32 %v887_v19, %v1029_v18  ;;  %v903_v21 = vpop.f32.mrb[0].mxu1  ;;  %v382_v22 = vpop.f32.mrb[1].mxu0 }
  0xe7   : > { %v455_v23 = vadd.f32 %v903_v21, %v1029_v18  ;;  %v383_v24 = vadd.f32 %v1029_v18, %v382_v22  ;;  %v446_v25 = vpop.f32.mrb[1].mxu1  ;;  %v888_v26 = vpop.f32.mrb[2].mxu0 }
  0xe8   : > { %v511_v27 = vmax.f32 %v391_v20, 0.0  ;;  %v447_v28 = vadd.f32 %v1029_v18, %v446_v25  ;;  %v394_v29 = vadd.f32 %v888_v26, %v1029_v18  ;;  %v904_v30 = vpop.f32.mrb[2].mxu1  ;;  %v385_v31 = vpop.f32.mrb[3].mxu0 }
  0xe9   : > { %v527_v32 = vmax.f32 %v455_v23, 0.0  ;;  %v509_v33 = vmax.f32 %v383_v24, 0.0  ;;  %v458_v34 = vadd.f32 %v904_v30, %v1029_v18  ;;  %v386_v35 = vadd.f32 %v1029_v18, %v385_v31  ;;  %v449_v36 = vpop.f32.mrb[3].mxu1 }
  0xea   : > { %v836_v37 = vpack.c.bf16 %v511_v27, %v511_v27  ;;  %v525_v38 = vmax.f32 %v447_v28, 0.0  ;;  %v512_v39 = vmax.f32 %v394_v29, 0.0  ;;  %v450_v40 = vadd.f32 %v1029_v18, %v449_v36 }
  0xeb   : > { %v852_v41 = vpack.c.bf16 %v527_v32, %v527_v32  ;;  %v834_v42 = vpack.c.bf16 %v509_v33, %v509_v33  ;;  %v528_v43 = vmax.f32 %v458_v34, 0.0  ;;  %v510_v44 = vmax.f32 %v386_v35, 0.0 }
  0xec   : > { %672 = vst.msk [vmem:[%s1041_s25 + $0x8] sm:$0xf] %vm669_vm2, %v836_v37  ;;  %v850_v45 = vpack.c.bf16 %v525_v38, %v525_v38  ;;  %v837_v46 = vpack.c.bf16 %v512_v39, %v512_v39  ;;  %v526_v47 = vmax.f32 %v450_v40, 0.0 }
  0xed   : > { %688 = vst.msk [vmem:[%s1041_s25 + $0x48] sm:$0xf] %vm669_vm2, %v852_v41  ;;  %670 = vst.msk [vmem:[%s1041_s25] sm:$0xf] %vm669_vm2, %v834_v42  ;;  %v853_v48 = vpack.c.bf16 %v528_v43, %v528_v43  ;;  %v835_v49 = vpack.c.bf16 %v510_v44, %v510_v44  ;;  %v891_v50 = vpop.f32.mrb[4].mxu0 }
  0xee   : > { %686 = vst.msk [vmem:[%s1041_s25 + $0x40] sm:$0xf] %vm669_vm2, %v850_v45  ;;  %673 = vst.msk [vmem:[%s1041_s25 + $0xc] sm:$0xf] %vm669_vm2, %v837_v46  ;;  %v851_v51 = vpack.c.bf16 %v526_v47, %v526_v47  ;;  %v407_v52 = vadd.f32 %v891_v50, %v1029_v18  ;;  %v907_v53 = vpop.f32.mrb[4].mxu1  ;;  %v398_v54 = vpop.f32.mrb[5].mxu0 }
  0xef   : > { %689 = vst.msk [vmem:[%s1041_s25 + $0x4c] sm:$0xf] %vm669_vm2, %v853_v48  ;;  %671 = vst.msk [vmem:[%s1041_s25 + $0x4] sm:$0xf] %vm669_vm2, %v835_v49  ;;  %v471_v55 = vadd.f32 %v907_v53, %v1029_v18  ;;  %v399_v56 = vadd.f32 %v1029_v18, %v398_v54  ;;  %v462_v57 = vpop.f32.mrb[5].mxu1  ;;  %v892_v58 = vpop.f32.mrb[6].mxu0 }
  0xf0   : > { %687 = vst.msk [vmem:[%s1041_s25 + $0x44] sm:$0xf] %vm669_vm2, %v851_v51  ;;  %v515_v59 = vmax.f32 %v407_v52, 0.0  ;;  %v463_v60 = vadd.f32 %v1029_v18, %v462_v57  ;;  %v410_v61 = vadd.f32 %v892_v58, %v1029_v18  ;;  %v908_v62 = vpop.f32.mrb[6].mxu1  ;;  %v401_v63 = vpop.f32.mrb[7].mxu0 }
  0xf1   : > { %v531_v0 = vmax.f32 %v471_v55, 0.0  ;;  %v513_v1 = vmax.f32 %v399_v56, 0.0  ;;  %v474_v2 = vadd.f32 %v908_v62, %v1029_v18  ;;  %v402_v3 = vadd.f32 %v1029_v18, %v401_v63  ;;  %v465_v4 = vpop.f32.mrb[7].mxu1 }
  0xf2   : > { %v840_v5 = vpack.c.bf16 %v515_v59, %v515_v59  ;;  %v529_v6 = vmax.f32 %v463_v60, 0.0  ;;  %v516_v7 = vmax.f32 %v410_v61, 0.0  ;;  %v466_v8 = vadd.f32 %v1029_v18, %v465_v4 }
  0xf3   : > { %v856_v9 = vpack.c.bf16 %v531_v0, %v531_v0  ;;  %v838_v10 = vpack.c.bf16 %v513_v1, %v513_v1  ;;  %v532_v11 = vmax.f32 %v474_v2, 0.0  ;;  %v514_v12 = vmax.f32 %v402_v3, 0.0 }
  0xf4   : > { %676 = vst.msk [vmem:[%s1041_s25 + $0x18] sm:$0xf] %vm669_vm2, %v840_v5  ;;  %v854_v13 = vpack.c.bf16 %v529_v6, %v529_v6  ;;  %v841_v14 = vpack.c.bf16 %v516_v7, %v516_v7  ;;  %v530_v15 = vmax.f32 %v466_v8, 0.0 }
  0xf5   : > { %692 = vst.msk [vmem:[%s1041_s25 + $0x58] sm:$0xf] %vm669_vm2, %v856_v9  ;;  %674 = vst.msk [vmem:[%s1041_s25 + $0x10] sm:$0xf] %vm669_vm2, %v838_v10  ;;  %v857_v16 = vpack.c.bf16 %v532_v11, %v532_v11  ;;  %v839_v17 = vpack.c.bf16 %v514_v12, %v514_v12  ;;  %v895_v19 = vpop.f32.mrb[8].mxu0 }
  0xf6   : > { %690 = vst.msk [vmem:[%s1041_s25 + $0x50] sm:$0xf] %vm669_vm2, %v854_v13  ;;  %677 = vst.msk [vmem:[%s1041_s25 + $0x1c] sm:$0xf] %vm669_vm2, %v841_v14  ;;  %v855_v20 = vpack.c.bf16 %v530_v15, %v530_v15  ;;  %v423_v21 = vadd.f32 %v895_v19, %v1029_v18  ;;  %v911_v22 = vpop.f32.mrb[8].mxu1  ;;  %v414_v23 = vpop.f32.mrb[9].mxu0 }
  0xf7   : > { %693 = vst.msk [vmem:[%s1041_s25 + $0x5c] sm:$0xf] %vm669_vm2, %v857_v16  ;;  %675 = vst.msk [vmem:[%s1041_s25 + $0x14] sm:$0xf] %vm669_vm2, %v839_v17  ;;  %v487_v24 = vadd.f32 %v911_v22, %v1029_v18  ;;  %v415_v25 = vadd.f32 %v1029_v18, %v414_v23  ;;  %v478_v26 = vpop.f32.mrb[9].mxu1  ;;  %v896_v27 = vpop.f32.mrb[10].mxu0 }
  0xf8   : > { %691 = vst.msk [vmem:[%s1041_s25 + $0x54] sm:$0xf] %vm669_vm2, %v855_v20  ;;  %v519_v28 = vmax.f32 %v423_v21, 0.0  ;;  %v479_v29 = vadd.f32 %v1029_v18, %v478_v26  ;;  %v426_v30 = vadd.f32 %v896_v27, %v1029_v18  ;;  %v912_v31 = vpop.f32.mrb[10].mxu1  ;;  %v417_v32 = vpop.f32.mrb[11].mxu0 }
  0xf9   : > { %v535_v33 = vmax.f32 %v487_v24, 0.0  ;;  %v517_v34 = vmax.f32 %v415_v25, 0.0  ;;  %v490_v35 = vadd.f32 %v912_v31, %v1029_v18  ;;  %v418_v36 = vadd.f32 %v1029_v18, %v417_v32  ;;  %v481_v37 = vpop.f32.mrb[11].mxu1 }
  0xfa   : > { %v844_v38 = vpack.c.bf16 %v519_v28, %v519_v28  ;;  %v533_v39 = vmax.f32 %v479_v29, 0.0  ;;  %v520_v40 = vmax.f32 %v426_v30, 0.0  ;;  %v482_v41 = vadd.f32 %v1029_v18, %v481_v37 }
  0xfb   : > { %v860_v42 = vpack.c.bf16 %v535_v33, %v535_v33  ;;  %v842_v43 = vpack.c.bf16 %v517_v34, %v517_v34  ;;  %v536_v44 = vmax.f32 %v490_v35, 0.0  ;;  %v518_v45 = vmax.f32 %v418_v36, 0.0 }
  0xfc   : > { %680 = vst.msk [vmem:[%s1041_s25 + $0x28] sm:$0xf] %vm669_vm2, %v844_v38  ;;  %v858_v46 = vpack.c.bf16 %v533_v39, %v533_v39  ;;  %v845_v47 = vpack.c.bf16 %v520_v40, %v520_v40  ;;  %v534_v48 = vmax.f32 %v482_v41, 0.0 }
  0xfd   : > { %696 = vst.msk [vmem:[%s1041_s25 + $0x68] sm:$0xf] %vm669_vm2, %v860_v42  ;;  %678 = vst.msk [vmem:[%s1041_s25 + $0x20] sm:$0xf] %vm669_vm2, %v842_v43  ;;  %v861_v49 = vpack.c.bf16 %v536_v44, %v536_v44  ;;  %v843_v50 = vpack.c.bf16 %v518_v45, %v518_v45  ;;  %v899_v51 = vpop.f32.mrb[12].mxu0 }
  0xfe   : > { %694 = vst.msk [vmem:[%s1041_s25 + $0x60] sm:$0xf] %vm669_vm2, %v858_v46  ;;  %681 = vst.msk [vmem:[%s1041_s25 + $0x2c] sm:$0xf] %vm669_vm2, %v845_v47  ;;  %v859_v52 = vpack.c.bf16 %v534_v48, %v534_v48  ;;  %v439_v53 = vadd.f32 %v899_v51, %v1029_v18  ;;  %v915_v54 = vpop.f32.mrb[12].mxu1  ;;  %v430_v55 = vpop.f32.mrb[13].mxu0 }
  0xff   : > { %697 = vst.msk [vmem:[%s1041_s25 + $0x6c] sm:$0xf] %vm669_vm2, %v861_v49  ;;  %679 = vst.msk [vmem:[%s1041_s25 + $0x24] sm:$0xf] %vm669_vm2, %v843_v50  ;;  %v503_v56 = vadd.f32 %v915_v54, %v1029_v18  ;;  %v431_v57 = vadd.f32 %v1029_v18, %v430_v55  ;;  %v494_v58 = vpop.f32.mrb[13].mxu1  ;;  %v900_v59 = vpop.f32.mrb[14].mxu0 }
 0x100   : > { %695 = vst.msk [vmem:[%s1041_s25 + $0x64] sm:$0xf] %vm669_vm2, %v859_v52  ;;  %v523_v60 = vmax.f32 %v439_v53, 0.0  ;;  %v495_v61 = vadd.f32 %v1029_v18, %v494_v58  ;;  %v442_v62 = vadd.f32 %v900_v59, %v1029_v18  ;;  %v916_v63 = vpop.f32.mrb[14].mxu1  ;;  %v433_v0 = vpop.f32.mrb[15].mxu0 }
 0x101   : > { %v539_v1 = vmax.f32 %v503_v56, 0.0  ;;  %v521_v2 = vmax.f32 %v431_v57, 0.0  ;;  %v506_v3 = vadd.f32 %v916_v63, %v1029_v18  ;;  %v434_v4 = vadd.f32 %v1029_v18, %v433_v0  ;;  %v497_v5 = vpop.f32.mrb[15].mxu1 }
 0x102   : > { %v848_v6 = vpack.c.bf16 %v523_v60, %v523_v60  ;;  %v537_v7 = vmax.f32 %v495_v61, 0.0  ;;  %v524_v8 = vmax.f32 %v442_v62, 0.0  ;;  %v498_v9 = vadd.f32 %v1029_v18, %v497_v5 }
 0x103   : > { %v864_v10 = vpack.c.bf16 %v539_v1, %v539_v1  ;;  %v846_v11 = vpack.c.bf16 %v521_v2, %v521_v2  ;;  %v540_v12 = vmax.f32 %v506_v3, 0.0  ;;  %v522_v13 = vmax.f32 %v434_v4, 0.0 }
 0x104   : > { %684 = vst.msk [vmem:[%s1041_s25 + $0x38] sm:$0xf] %vm669_vm2, %v848_v6  ;;  %v862_v14 = vpack.c.bf16 %v537_v7, %v537_v7  ;;  %v849_v15 = vpack.c.bf16 %v524_v8, %v524_v8  ;;  %v538_v16 = vmax.f32 %v498_v9, 0.0 }
 0x105   : > { %700 = vst.msk [vmem:[%s1041_s25 + $0x78] sm:$0xf] %vm669_vm2, %v864_v10  ;;  %682 = vst.msk [vmem:[%s1041_s25 + $0x30] sm:$0xf] %vm669_vm2, %v846_v11  ;;  %v865_v17 = vpack.c.bf16 %v540_v12, %v540_v12  ;;  %v847_v19 = vpack.c.bf16 %v522_v13, %v522_v13 }
 0x106   : > { %698 = vst.msk [vmem:[%s1041_s25 + $0x70] sm:$0xf] %vm669_vm2, %v862_v14  ;;  %685 = vst.msk [vmem:[%s1041_s25 + $0x3c] sm:$0xf] %vm669_vm2, %v849_v15  ;;  %v863_v18 = vpack.c.bf16 %v538_v16, %v538_v16 }
 0x107   : > { %701 = vst.msk [vmem:[%s1041_s25 + $0x7c] sm:$0xf] %vm669_vm2, %v865_v17  ;;  %683 = vst.msk [vmem:[%s1041_s25 + $0x34] sm:$0xf] %vm669_vm2, %v847_v19 }
 0x108   : > { %699 = vst.msk [vmem:[%s1041_s25 + $0x74] sm:$0xf] %vm669_vm2, %v863_v18 }
 0x109 PF: > { %s13_s12 = sadd.s32 1, %s951_s12  }
 0x10a   : > { %p10_p4 = scmp.ge.s32.totalorder %s13_s12, 4  }
 0x10c   :  { %12 = sbr.rel (!%p10_p4) target bundleno = 1 (0x1), region = 62 }

// kernel: bottleneck_forward.4
= control target key start
LH: loop header
LB: loop body
LE: loop exit
PB: predicated region body
PF: predicated region fallthrough
CT: control target
= control target key end

     0   :  { %s910_s12 = smov 0   ;;  %s912_s13 = smov 0   ;;  %s1033_s0 = inlined_call_operand.vmem [shape: bf16[2,2,2,40,24], index: 0, kind: input, shape index: {}]   ;;  %s1034_s1 = inlined_call_operand.vmem [shape: bf16[3,24,8], index: 1, kind: input, shape index: {}]   ;;  %s1035_s2 = inlined_call_operand.vmem [shape: f32[1,8], index: 2, kind: input, shape index: {}]   ;;  %s1036_s3 = inlined_call_operand.vmem [shape: bf16[2,64,8], index: 3, kind: output, shape index: {}]  }
   0x1   :  { %s914_s14 = smov 0   ;;  %s916_s15 = smov 0  }
   0x2   :  { %s918_s16 = smov 0   ;;  %s920_s17 = smov 0  }
   0x3   :  { %s922_s18 = smov 0  }
   0x4 LB: > { %s22_s19 = sadd.s32 1, %s880_s16  ;;  %s25_s20 = sadd.s32 1, %s884_s17  ;;  %s888_s18 = sphi %s922_s18, %s13_s18   ;;  %s884_s17 = sphi %s920_s17, %s1042_s17   ;;  %s880_s16 = sphi %s918_s16, %s1041_s16   ;;  %s876_s15 = sphi %s916_s15, %s1040_s15   ;;  %s872_s14 = sphi %s914_s14, %s1039_s14   ;;  %s868_s13 = sphi %s912_s13, %s1038_s13   ;;  %s864_s12 = sphi %s910_s12, %s1037_s12  }
   0x5   : > { %p23_p0 = scmp.ge.s32.totalorder %s22_s19, 2  ;;  %p41_p1 = scmp.ne.s32.totalorder %s868_s13, %s864_s12 }
   0x6   : > { %p42_p2 = scmp.eq.s32.totalorder %s888_s18, 0  ;;  %s34_s24 = sadd.s32 1, %s868_s13 }
   0x7   : > { %s1044_s19 = smov (%p23_p0, %s22_s19), 0  ;;  %s1046_s20 = smov (!%p23_p0, %s25_s20), %s884_s17 }
   0x8   : > { %p43_p3 = por %p42_p2, %p41_p1  ;;  %p27_p4 = scmp.ge.s32.totalorder %s1046_s20, 2 }
   0x9   : > { %s30_s21 = ssub.s32 %s880_s16, %s1044_s19  ;;  %p670_p6 = scmp.ge.s32.totalorder %s888_s18, 4 }
   0xa   : > { %s1048_s20 = smov (%p27_p4, %s1046_s20), 0 }
   0xb   : > { %s29_s22 = ssub.s32 %s884_s17, %s1048_s20  ;;  %143 = sbr.rel (%p670_p6) target bundleno = 30 (0x1e), region = 24 }
   0xc   : > { %s31_s23 = sor.u32 %s30_s21, %s29_s22 }
   0xd   : > { %p32_p5 = scmp.eq.s32.totalorder %s31_s23, 0 }
   0xf   : > { %s961_s25 = scalar_select %p32_p5, %s868_s13, %s34_s24  }
  0x12   : > { %146 = sbr.rel (!%p43_p3) target bundleno = 30 (0x1e), region = 28  ;;  %s148_s26 = sand.u32 (%p43_p3), 1, %s868_s13  }
  0x13   : > { %s763_s27 = smul.u32 (%p43_p3), 5, %s880_s16 }
  0x14   : > { %s762_s28 = smul.u32 (%p43_p3), 40, %s148_s26 }
  0x15   : > { %s764_s29 = smul.u32 (%p43_p3), 20, %s884_s17 }
  0x16   : > { %s150_s8 = scalar_lea.vmem (%p43_p3), [#allocation2], %s762_s28 }
  0x17   : > { %s153_s30 = sadd.s32 (%p43_p3), %s764_s29, %s763_s27 }
  0x18   : > { %s671_s4 = sshll.u32 (%p43_p3), %s153_s30, 2 }
  0x19   : > { %s155_s7 = scalar_lea.vmem %s1033_s0, %s671_s4 }
  0x1a   : > { %v171_v0 = vld [vmem:[%s155_s7] sm:$0xff]   ;;  %v175_v1 = vld [vmem:[%s155_s7 + $0x8] sm:$0xff]   ;;  %v179_v2 = vld [vmem:[%s155_s7 + $0x10] sm:$0xf] }
  0x1b   : > { %172 = vst [vmem:[%s150_s8] sm:$0xff] %v171_v0   ;;  %176 = vst [vmem:[%s150_s8 + $0x8] sm:$0xff] %v175_v1   ;;  %v181_v3 = vld [vmem:[%s155_s7 + $0x28] sm:$0xff]   ;;  %v185_v4 = vld [vmem:[%s155_s7 + $0x30] sm:$0xff]  }
  0x1c   : > { %180 = vst [vmem:[%s150_s8 + $0x10] sm:$0xf] %v179_v2  ;;  %v189_v5 = vld [vmem:[%s155_s7 + $0x38] sm:$0xf]  ;;  %182 = vst [vmem:[%s150_s8 + $0x14] sm:$0xff] %v181_v3  }
  0x1d   : > { %186 = vst [vmem:[%s150_s8 + $0x1c] sm:$0xff] %v185_v4   ;;  %190 = vst [vmem:[%s150_s8 + $0x24] sm:$0xf] %v189_v5 }
  0x1e PF: > { %p672_p7 = scmp.ge.s32.totalorder %s888_s18, 1  ;;  %p232_p8 = scmp.lt.s32.totalorder %s888_s18, 5 }
  0x20   : > { %p233_p9 = pnand %p672_p7, %p232_p8 }
  0x21   : > { %v822_v6 = vld [vmem:[%s1034_s1] sm:$0xff] (!%p233_p9)   ;;  %vm319_vm0 = vcmask (!%p233_p9), 1043456   ;;  %v823_v7 = vld [vmem:[%s1034_s1 + $0x8] ss:$0 sps:$4 sm:$0xff] (!%p233_p9)   ;;  %s239_s22 = sand.u32 (!%p233_p9), 1, %s864_s12   ;;  %v826_v8 = vld [vmem:[%s1034_s1 + $0x18] sm:$0xff] (!%p233_p9)  }
  0x22   : > { %236 = sbr.rel (%p233_p9) target bundleno = 278 (0x116), region = 69  ;;  %735 = vmatprep.subr.bf16.mxu0 (!%p233_p9), %v822_v6  ;;  %vm312_vm1 = vcmask (!%p233_p9), 195584   ;;  %v827_v9 = vld [vmem:[%s1034_s1 + $0xc] sm:$0xff] (!%p233_p9)   ;;  %v398_v10 = vsel (!%p233_p9), %vm319_vm0, %v823_v7, 0  ;;  %v828_v11 = vld [vmem:[%s1034_s1 + $0x14] ss:$0 sps:$4 sm:$0xff] (!%p233_p9)  }
  0x23   : > { %s765_s23 = smul.u32 (!%p233_p9), 40, %s239_s22  ;;  %736 = vmatpush3.bf16.msra.mxu0 (!%p233_p9), %v822_v6  ;;  %727 = vmatprep.subr.bf16.mxu1 (!%p233_p9), %v827_v9  ;;  %v321_v14 = vsel (!%p233_p9), %vm319_vm0, %v828_v11, 0  ;;  %v829_v15 = vld [vmem:[%s1034_s1 + $0x20] ss:$0 sps:$4 sm:$0xff] (!%p233_p9)   ;;  %s673_s6 = sshll.u32 (!%p233_p9), %s872_s14, 2  ;;  %vm569_vm2 = vcmask (!%p233_p9), 60416  }
  0x24   : > { %760 = vmatprep.subr.msk.bf16.mxu0 (!%p233_p9), %vm319_vm0, %v823_v7  ;;  %728 = vmatpush3.bf16.msra.mxu1 (!%p233_p9), %v827_v9  ;;  %v483_v19 = vsel (!%p233_p9), %vm319_vm0, %v829_v15, 0  ;;  %p267_p10 = scmp.lt.s32.totalorder (!%p233_p9), %s876_s15, 1  ;;  %p269_p11 = scmp.lt.s32.totalorder (!%p233_p9), %s673_s6, 7  ;;  %v704_v26 = vld [vmem:[%s1035_s2] ss:$0 sm:$0xff] (!%p233_p9) }
  0x25   : > { %s241_s12 = scalar_lea.vmem (!%p233_p9), [#allocation2], %s765_s23  ;;  %759 = vmatprep.subr.msk.bf16.mxu1 (!%p233_p9), %vm319_vm0, %v828_v11 }
  0x26   : > { %v824_v12 = vld [vmem:[%s241_s12] sm:$0xff] (!%p233_p9)   ;;  %v825_v13 = vld [vmem:[%s241_s12 + $0x8] sm:$0xff] (!%p233_p9)   ;;  %v830_v16 = vld [vmem:[%s241_s12 + $0x14] sm:$0xff] (!%p233_p9)  }
  0x27   : > { %738 = vmatpush3.bf16.msra.mxu0 (!%p233_p9), %v398_v10  ;;  %739 = vmatprep.mubr.msk.bf16.mxu0 (!%p233_p9), %vm312_vm1, %v824_v12  ;;  %v831_v17 = vld [vmem:[%s241_s12 + $0x1c] sm:$0xff] (!%p233_p9)   ;;  %v832_v18 = vld [vmem:[%s241_s12 + $0x4] sm:$0xff] (!%p233_p9)   ;;  %v833_v20 = vld [vmem:[%s241_s12 + $0xc] sm:$0xff] (!%p233_p9)  }
  0x28   : > { %743 = vmatprep.subr.bf16.mxu0 (!%p233_p9), %v826_v8  ;;  %730 = vmatpush3.bf16.msra.mxu1 (!%p233_p9), %v321_v14 }
  0x29   : > { %731 = vmatprep.mubr.msk.bf16.mxu1 %vm312_vm1, %v830_v16  ;;  %s1050_s15 = smov (!%p267_p10, %s876_s15), 1  ;;  %s1052_s6 = smov (!%p269_p11, %s673_s6), 7 }
  0x2a   : > { %740 = vmatmul.mubr.msk.bf16.vlgmr.msra.gmra.mrb[0].mxu0 %vm312_vm1, %v825_v13  ;;  %s674_s7 = sshll.u32 %s1050_s15, 3 }
  0x2b   : > { %744 = vmatpush3.bf16.msra.mxu0 %v826_v8  ;;  %747 = vmatprep.mubr.msk.bf16.mxu0 %vm312_vm1, %v832_v18  ;;  %s272_s8 = sadd.s32 %s674_s7, %s1052_s6 }
  0x2c   : > { %761 = vmatprep.subr.msk.bf16.mxu0 %vm319_vm0, %v829_v15  ;;  %732 = vmatmul.mubr.msk.bf16.vlgmr.msra.gmra.mrb[0].mxu1 %vm312_vm1, %v831_v17  ;;  %s675_s14 = sshll.u32 %s272_s8, 2 }
  0x2d   : > { %s274_s21 = scalar_lea.vmem %s1036_s3, %s675_s14 }
  0x2f   : > { %746 = vmatpush3.bf16.msra.mxu0 %v483_v19 }
  0x36   : > { %748 = vmatmul.mubr.msk.bf16.vlgmr.msra.gmra.mrb[0].mxu0 %vm312_vm1, %v833_v20 }
  0xff   : > { %v733_v21 = vpop.f32.mrb[0].mxu1 }
 0x100   : > { %v357_v22 = vpop.f32.mrb[1].mxu1 }
 0x101   : > { %v734_v23 = vpop.f32.mrb[2].mxu1 }
 0x102   : > { %v360_v24 = vpop.f32.mrb[3].mxu1 }
 0x109   : > { %v749_v25 = vpop.f32.mrb[0].mxu0 }
 0x10a   : > { %v751_v27 = vadd.f32 %v749_v25, %v733_v21  ;;  %v519_v28 = vpop.f32.mrb[1].mxu0 }
 0x10b   : > { %v752_v29 = vadd.f32 %v519_v28, %v357_v22  ;;  %v750_v30 = vpop.f32.mrb[2].mxu0 }
 0x10c   : > { %v547_v31 = vadd.f32 %v751_v27, %v704_v26  ;;  %v753_v32 = vadd.f32 %v750_v30, %v734_v23  ;;  %v522_v33 = vpop.f32.mrb[3].mxu0 }
 0x10d   : > { %v545_v34 = vadd.f32 %v752_v29, %v704_v26  ;;  %v754_v35 = vadd.f32 %v522_v33, %v360_v24 }
 0x10e   : > { %v551_v36 = vmax.f32 %v547_v31, 0.0  ;;  %v548_v37 = vadd.f32 %v753_v32, %v704_v26 }
 0x10f   : > { %v549_v38 = vmax.f32 %v545_v34, 0.0  ;;  %v546_v39 = vadd.f32 %v754_v35, %v704_v26 }
 0x110   : > { %v713_v40 = vpack.c.bf16 %v551_v36, %v551_v36  ;;  %v552_v41 = vmax.f32 %v548_v37, 0.0 }
 0x111   : > { %v711_v42 = vpack.c.bf16 %v549_v38, %v549_v38  ;;  %v550_v43 = vmax.f32 %v546_v39, 0.0 }
 0x112   : > { %572 = vst.msk [vmem:[%s274_s21 + $0x8] sm:$0xf] %vm569_vm2, %v713_v40  ;;  %v714_v44 = vpack.c.bf16 %v552_v41, %v552_v41 }
 0x113   : > { %570 = vst.msk [vmem:[%s274_s21] sm:$0xf] %vm569_vm2, %v711_v42  ;;  %v712_v45 = vpack.c.bf16 %v550_v43, %v550_v43 }
 0x114   : > { %573 = vst.msk [vmem:[%s274_s21 + $0xc] sm:$0xf] %vm569_vm2, %v714_v44 }
 0x115   : > { %571 = vst.msk [vmem:[%s274_s21 + $0x4] sm:$0xf] %vm569_vm2, %v712_v45 }
 0x116 PF: > { %s13_s18 = sadd.s32 1, %s888_s18   ;;  %s1037_s12 = smov %s868_s13 }
 0x117   : > { %p10_p12 = scmp.ge.s32.totalorder %s13_s18, 6   ;;  %s1038_s13 = smov %s961_s25 }
 0x118   : > { %s1039_s14 = smov %s880_s16  ;;  %s1040_s15 = smov %s884_s17 }
 0x119   : > { %s1041_s16 = smov %s1044_s19  ;;  %s1042_s17 = smov %s1048_s20 }
 0x11a   :  { %12 = sbr.rel (!%p10_p12) target bundleno = 4 (0x4), region = 111 }

// kernel: bottleneck_forward.5
= control target key start
LH: loop header
LB: loop body
LE: loop exit
PB: predicated region body
PF: predicated region fallthrough
CT: control target
= control target key end

     0   :  { %s745_s18 = smov 0   ;;  %s801_s0 = inlined_call_operand.vmem [shape: bf16[128,8], index: 0, kind: input, shape index: {}]   ;;  %s802_s1 = inlined_call_operand.vmem [shape: bf16[8,32], index: 1, kind: input, shape index: {}]   ;;  %s803_s2 = inlined_call_operand.vmem [shape: f32[1,32], index: 2, kind: input, shape index: {}]   ;;  %s804_s3 = inlined_call_operand.vmem [shape: bf16[128,4], index: 3, kind: input, shape index: {}]   ;;  %s805_s4 = inlined_call_operand.vmem [shape: bf16[4,32], index: 4, kind: input, shape index: {}]   ;;  %s806_s5 = inlined_call_operand.vmem [shape: bf16[128,32], index: 5, kind: output, shape index: {}]  }
   0x1 LB: > { %s605_s19 = sadd.s32 4294967295, %s713_s18   ;;  %p609_p0 = scmp.ge.s32.totalorder %s713_s18, 1  ;;  %s713_s18 = sphi %s745_s18, %s15_s18  }
   0x2   : > { %p199_p1 = scmp.lt.s32.totalorder %s713_s18, 3 }
   0x4   : > { %p200_p2 = pnand %p609_p0, %p199_p1 }
   0x5   : > { %v268_v0 = vld [vmem:[%s805_s4] sm:$0x3] (!%p200_p2)  ;;  %vm302_vm0 = vcmask (!%p200_p2), 1041408   ;;  %vm404_vm1 = vcmask (!%p200_p2), 1043456   ;;  %s610_s24 = sshll.u32 (!%p200_p2), %s605_s19, 3  ;;  %vm289_vm2 = vcmask (!%p200_p2), 31744  }
   0x6   : > { %203 = sbr.rel (%p200_p2) target bundleno = 251 (0xfb), region = 40  ;;  %v259_v1 = vld [vmem:[%s802_s1] sm:$0xf] (!%p200_p2)  ;;  %689 = vmatprep.subr.msk.bf16.mxu1 (!%p200_p2), %vm302_vm0, %v268_v0  ;;  %v304_v2 = vsel (!%p200_p2), %vm302_vm0, %v268_v0, 0  ;;  %p233_p3 = scmp.lt.s32.totalorder (!%p200_p2), %s610_s24, 15  ;;  %vm391_vm3 = vcmask (!%p200_p2), 64512  }
   0x7   : > { %690 = vmatprep.subr.msk.bf16.mxu0 (!%p200_p2), %vm404_vm1, %v259_v1  ;;  %v406_v3 = vsel (!%p200_p2), %vm404_vm1, %v259_v1, 0  ;;  %662 = vmatpush3.bf16.msra.mxu1 (!%p200_p2), %v304_v2  ;;  %v632_v14 = vld [vmem:[%s803_s2] ss:$0 sm:$0xff] (!%p200_p2)  ;;  %vm528_vm4 = vcmask (!%p200_p2), 257024  }
   0x8   : > { %672 = vmatpush3.bf16.msra.mxu0 (!%p200_p2), %v406_v3 }
   0xd   : > { %s808_s24 = smov (!%p233_p3, %s610_s24), 15 }
   0xe   : > { %s759_s25 = sshll.u32 %s808_s24, 2 }
   0xf   : > { %s242_s28 = scalar_lea.vmem %s804_s3, %s759_s25  ;;  %s236_s6 = scalar_lea.vmem %s801_s0, %s759_s25 }
  0x10   : > { %v699_v4 = vld [vmem:[%s242_s28] sm:$0xff]   ;;  %v701_v6 = vld [vmem:[%s242_s28 + $0x8] sm:$0xff]   ;;  %v703_v8 = vld [vmem:[%s242_s28 + $0x10] sm:$0xff]   ;;  %s780_s11 = scalar_lea.vmem %s806_s5, %s759_s25 }
  0x11   : > { %v700_v5 = vld [vmem:[%s236_s6] sm:$0xff]   ;;  %663 = vmatprep.mubr.msk.bf16.mxu1 %vm289_vm2, %v699_v4  ;;  %v702_v7 = vld [vmem:[%s236_s6 + $0x8] sm:$0xff]   ;;  %v704_v9 = vld [vmem:[%s236_s6 + $0x10] sm:$0xff]  }
  0x12   : > { %673 = vmatprep.mubr.msk.bf16.mxu0 %vm391_vm3, %v700_v5  ;;  %664 = vmatmul.mubr.msk.bf16.vlgmr.msra.gmra.mrb[0].mxu1 %vm289_vm2, %v701_v6  ;;  %v705_v10 = vld [vmem:[%s242_s28 + $0x18] sm:$0xff]  }
  0x13   : > { %674 = vmatmul.mubr.msk.bf16.vlgmr.msra.gmra.mrb[0].mxu0 %vm391_vm3, %v702_v7  ;;  %667 = vmatprep.mubr.msk.bf16.mxu1 %vm289_vm2, %v703_v8  ;;  %v706_v11 = vld [vmem:[%s236_s6 + $0x18] sm:$0xff]  }
  0x14   : > { %677 = vmatprep.mubr.msk.bf16.mxu0 %vm391_vm3, %v704_v9 }
  0x1a   : > { %668 = vmatmul.mubr.msk.bf16.gmra.mrb[4].mxu1 %vm289_vm2, %v705_v10 }
  0x1b   : > { %678 = vmatmul.mubr.msk.bf16.gmra.mrb[4].mxu0 %vm391_vm3, %v706_v11 }
  0xe5   : > { %v665_v12 = vpop.f32.mrb[0].mxu1 }
  0xe6   : > { %v675_v13 = vpop.f32.mrb[0].mxu0  ;;  %v340_v15 = vpop.f32.mrb[1].mxu1 }
  0xe7   : > { %v451_v16 = vadd.f32 %v675_v13, %v665_v12  ;;  %v442_v17 = vpop.f32.mrb[1].mxu0  ;;  %v666_v18 = vpop.f32.mrb[2].mxu1 }
  0xe8   : > { %v443_v19 = vadd.f32 %v442_v17, %v340_v15  ;;  %v676_v20 = vpop.f32.mrb[2].mxu0  ;;  %v343_v21 = vpop.f32.mrb[3].mxu1 }
  0xe9   : > { %v482_v22 = vadd.f32 %v632_v14, %v451_v16  ;;  %v454_v23 = vadd.f32 %v676_v20, %v666_v18  ;;  %v445_v24 = vpop.f32.mrb[3].mxu0 }
  0xea   : > { %v480_v25 = vadd.f32 %v632_v14, %v443_v19  ;;  %v446_v26 = vadd.f32 %v445_v24, %v343_v21 }
  0xeb   : > { %v490_v27 = vmax.f32 %v482_v22, 0.0  ;;  %v483_v28 = vadd.f32 %v632_v14, %v454_v23 }
  0xec   : > { %v488_v29 = vmax.f32 %v480_v25, 0.0  ;;  %v481_v30 = vadd.f32 %v632_v14, %v446_v26 }
  0xed   : > { %v645_v31 = vpack.c.bf16 %v490_v27, %v490_v27  ;;  %v491_v32 = vmax.f32 %v483_v28, 0.0  ;;  %v669_v33 = vpop.f32.mrb[4].mxu1 }
  0xee   : > { %v643_v34 = vpack.c.bf16 %v488_v29, %v488_v29  ;;  %v489_v35 = vmax.f32 %v481_v30, 0.0  ;;  %v679_v36 = vpop.f32.mrb[4].mxu0  ;;  %v356_v37 = vpop.f32.mrb[5].mxu1 }
  0xef   : > { %531 = vst.msk [vmem:[%s780_s11 + $0x8] sm:$0xf] %vm528_vm4, %v645_v31  ;;  %v646_v38 = vpack.c.bf16 %v491_v32, %v491_v32  ;;  %v467_v39 = vadd.f32 %v679_v36, %v669_v33  ;;  %v458_v40 = vpop.f32.mrb[5].mxu0  ;;  %v670_v41 = vpop.f32.mrb[6].mxu1 }
  0xf0   : > { %529 = vst.msk [vmem:[%s780_s11] sm:$0xf] %vm528_vm4, %v643_v34  ;;  %v644_v42 = vpack.c.bf16 %v489_v35, %v489_v35  ;;  %v459_v43 = vadd.f32 %v458_v40, %v356_v37  ;;  %v680_v44 = vpop.f32.mrb[6].mxu0  ;;  %v359_v45 = vpop.f32.mrb[7].mxu1 }
  0xf1   : > { %532 = vst.msk [vmem:[%s780_s11 + $0xc] sm:$0xf] %vm528_vm4, %v646_v38  ;;  %v486_v46 = vadd.f32 %v632_v14, %v467_v39  ;;  %v470_v47 = vadd.f32 %v680_v44, %v670_v41  ;;  %v461_v48 = vpop.f32.mrb[7].mxu0 }
  0xf2   : > { %530 = vst.msk [vmem:[%s780_s11 + $0x4] sm:$0xf] %vm528_vm4, %v644_v42  ;;  %v484_v49 = vadd.f32 %v632_v14, %v459_v43  ;;  %v462_v50 = vadd.f32 %v461_v48, %v359_v45 }
  0xf3   : > { %v494_v51 = vmax.f32 %v486_v46, 0.0  ;;  %v487_v52 = vadd.f32 %v632_v14, %v470_v47 }
  0xf4   : > { %v492_v53 = vmax.f32 %v484_v49, 0.0  ;;  %v485_v54 = vadd.f32 %v632_v14, %v462_v50 }
  0xf5   : > { %v649_v55 = vpack.c.bf16 %v494_v51, %v494_v51  ;;  %v495_v56 = vmax.f32 %v487_v52, 0.0 }
  0xf6   : > { %v647_v57 = vpack.c.bf16 %v492_v53, %v492_v53  ;;  %v493_v58 = vmax.f32 %v485_v54, 0.0 }
  0xf7   : > { %535 = vst.msk [vmem:[%s780_s11 + $0x18] sm:$0xf] %vm528_vm4, %v649_v55  ;;  %v650_v59 = vpack.c.bf16 %v495_v56, %v495_v56 }
  0xf8   : > { %533 = vst.msk [vmem:[%s780_s11 + $0x10] sm:$0xf] %vm528_vm4, %v647_v57  ;;  %v648_v60 = vpack.c.bf16 %v493_v58, %v493_v58 }
  0xf9   : > { %536 = vst.msk [vmem:[%s780_s11 + $0x1c] sm:$0xf] %vm528_vm4, %v650_v59 }
  0xfa   : > { %534 = vst.msk [vmem:[%s780_s11 + $0x14] sm:$0xf] %vm528_vm4, %v648_v60 }
  0xfb PF: > { %s15_s18 = sadd.s32 1, %s713_s18  }
  0xfc   : > { %p12_p4 = scmp.ge.s32.totalorder %s15_s18, 4  }
  0xfe   :  { %14 = sbr.rel (!%p12_p4) target bundleno = 1 (0x1), region = 73 }

</bundles_post_ra>
